<compile_context>
chip_gen: v7x
topology: tpu7x:2x2x1
jax: 0.10.0
libtpu: 0.0.40
codegen_flags: <defaults>
</compile_context>

<pallas_src>
import functools

import jax
import jax.numpy as jnp
from jax.experimental import pallas as pl
from jax.experimental.pallas import tpu as pltpu


# ----------------------------- config (Params.network['hidden_layers']) -----
HIDDEN_LAYERS = (32, 32)
NUM_ACTIONS = 6

# conv encoder: Conv2d(C_in -> OC, k=3, stride=2, pad=1) + ReLU + Flatten(HWC)
CONV_OC = 8
CONV_K = 3
CONV_STRIDE = 2
CONV_PAD = 1

PATCH_GROUP = 8     # patch positions folded per block-diagonal conv group
OUT_W = 128         # lane-dense fused output width


def _vmem_spec():
    return pl.BlockSpec(memory_space=pltpu.MemorySpace.VMEM)


# ----------------------------- Pallas kernel ---------------------------------
def fused_actor_critic_kernel(lr_ref, wa_ref, w3_ref, bias_ref, out_ref, *,
                              groups, b_pad, wcf_rows, gw, num_actions):
    """Fused conv encoder + actor/critic heads.

    lr_ref:   (groups*b_pad, wcf_rows)  im2col patches; row = g*b_pad + b, col = r*KKC_PAD + k
    wa_ref:   (wcf_rows + groups*gw + gw, gw)  [blockdiag conv+flatten | W1 [actor|critic] | W2 blockdiag]
    w3_ref:   (gw, OUT_W)   [aw3 | cw3] padded into a lane-dense 128-wide output layer
    bias_ref: (8, OUT_W)    row0: conv bias (tiled), row1: b1, row2: b2, row3: b3
    out_ref:  (b_pad, OUT_W) cols [0, num_actions) = log-softmax(actor), col num_actions = value
    """
    f32 = jnp.float32
    enc_rows = groups * gw

    b_conv = bias_ref[0:1, 0:gw]
    b_h1 = bias_ref[1:2, 0:gw]
    b_h2 = bias_ref[2:3, 0:gw]
    b_out = bias_ref[3:4, :]

    # conv-as-matmul; the HWC flatten is folded into the block-diagonal weight.  Fused ReLU.
    wcf = wa_ref[0:wcf_rows, :]
    enc = jnp.maximum(
        jnp.dot(lr_ref[...], wcf, preferred_element_type=f32) + b_conv, 0.0)   # (groups*b_pad, gw)

    # layer 1 of both heads: accumulate the enc_vec_size contraction group by group
    # (tile-aligned slices only -- no in-kernel reshape/relayout needed).
    acc = jnp.zeros((b_pad, gw), f32)
    for g in range(groups):
        e_g = enc[g * b_pad:(g + 1) * b_pad, :]                                 # (b_pad, gw)
        w1_g = wa_ref[wcf_rows + g * gw: wcf_rows + (g + 1) * gw, :]            # (gw, gw)
        acc = acc + jnp.dot(e_g, w1_g, preferred_element_type=f32)
    h1 = jnp.maximum(acc + b_h1, 0.0)                     # (b_pad, gw) = [actor_h1 | critic_h1]

    # layer 2 ([aw2 0; 0 cw2]) and output layer ([aw3 | cw3] in one 128-wide slab).
    w2 = wa_ref[wcf_rows + enc_rows: wcf_rows + enc_rows + gw, :]
    h2 = jnp.maximum(jnp.dot(h1, w2, preferred_element_type=f32) + b_h2, 0.0)
    logits = jnp.dot(h2, w3_ref[...], preferred_element_type=f32) + b_out       # (b_pad, OUT_W)

    # log-softmax over the num_actions valid action lanes only; the value lane passes through.
    col = jax.lax.broadcasted_iota(jnp.int32, logits.shape, 1)
    is_action = col < num_actions
    m = jnp.max(jnp.where(is_action, logits, -jnp.inf), axis=1, keepdims=True)
    z = logits - m
    ez = jnp.where(is_action, jnp.exp(jnp.where(is_action, z, 0.0)), 0.0)
    lse = jnp.log(jnp.sum(ez, axis=1, keepdims=True))
    out_ref[...] = jnp.where(is_action, z - lse, logits)


# ----------------------------- glue / params ---------------------------------
def im2col(x_nhwc, k, stride, pad):
    """Plain-JAX glue: extract (kh, kw, c)-ordered patches for the strided conv."""
    B, H, W, C = x_nhwc.shape
    xp = jnp.pad(x_nhwc, ((0, 0), (pad, pad), (pad, pad), (0, 0)))
    OH = (H + 2 * pad - k) // stride + 1
    OW = (W + 2 * pad - k) // stride + 1
    cols = []
    for kh in range(k):
        for kw in range(k):
            cols.append(xp[:, kh:kh + stride * (OH - 1) + 1:stride,
                           kw:kw + stride * (OW - 1) + 1:stride, :])
    patches = jnp.concatenate(cols, axis=-1)               # (B, OH, OW, k*k*C)
    return patches.reshape(B, OH * OW, k * k * C), OH, OW


def init_params(key, in_ch, enc_vec_size):
    """Deterministic synthetic parameters (no checkpoint loading)."""
    keys = jax.random.split(key, 7)

    def dense(k, fan_in, fan_out):
        kw, kb = jax.random.split(k)
        w = jax.random.normal(kw, (fan_in, fan_out), jnp.float32) / jnp.sqrt(fan_in)
        b = jax.random.normal(kb, (1, fan_out), jnp.float32) * 0.1
        return w, b

    p = {}
    p["conv_w"], p["conv_b"] = dense(keys[0], CONV_K * CONV_K * in_ch, CONV_OC)
    dims = [enc_vec_size, *HIDDEN_LAYERS]
    p["aw1"], p["ab1"] = dense(keys[1], dims[0], dims[1])
    p["aw2"], p["ab2"] = dense(keys[2], dims[1], dims[2])
    p["aw3"], p["ab3"] = dense(keys[3], dims[2], NUM_ACTIONS)
    p["cw1"], p["cb1"] = dense(keys[4], dims[0], dims[1])
    p["cw2"], p["cb2"] = dense(keys[5], dims[1], dims[2])
    p["cw3"], p["cb3"] = dense(keys[6], dims[2], 1)
    return p


def pack_params(params, OH, OW):
    """One-time packing of the module weights into the fused kernel's VMEM buffers."""
    f32 = jnp.float32
    R = PATCH_GROUP
    assert (OH * OW) % R == 0
    kkc = params["conv_w"].shape[0]
    kkc_pad = ((kkc + 7) // 8) * 8                         # 36 -> 40 (8-sublane aligned)
    gw = R * CONV_OC                                       # 64
    h1, h2 = HIDDEN_LAYERS
    assert gw == 2 * h1 == 2 * h2, "packed WA buffer assumes equal layer widths"

    conv_w_pad = jnp.pad(params["conv_w"], ((0, kkc_pad - kkc), (0, 0)))
    # conv + HWC flatten folded into one block-diagonal weight (same block for every patch group).
    wcf = jnp.zeros((R * kkc_pad, gw), f32)
    for r in range(R):
        wcf = wcf.at[r * kkc_pad:(r + 1) * kkc_pad, r * CONV_OC:(r + 1) * CONV_OC].set(conv_w_pad)

    w1c = jnp.concatenate([params["aw1"], params["cw1"]], axis=1)        # (enc, 2*h1)
    w2c = jnp.zeros((2 * h1, 2 * h2), f32)
    w2c = w2c.at[:h1, :h2].set(params["aw2"])
    w2c = w2c.at[h1:, h2:].set(params["cw2"])
    wa = jnp.concatenate([wcf, w1c, w2c], axis=0)                        # (320 + 512 + 64, 64)

    w3p = jnp.zeros((2 * h2, OUT_W), f32)
    w3p = w3p.at[:h2, :NUM_ACTIONS].set(params["aw3"])
    w3p = w3p.at[h2:, NUM_ACTIONS].set(params["cw3"][:, 0])

    bias = jnp.zeros((8, OUT_W), f32)
    bias = bias.at[0, :gw].set(jnp.tile(params["conv_b"], (1, R))[0])
    bias = bias.at[1, :gw].set(jnp.concatenate([params["ab1"], params["cb1"]], axis=1)[0])
    bias = bias.at[2, :gw].set(jnp.concatenate([params["ab2"], params["cb2"]], axis=1)[0])
    bias = bias.at[3, :NUM_ACTIONS].set(params["ab3"][0])
    bias = bias.at[3, NUM_ACTIONS].set(params["cb3"][0, 0])
    return {"wa": wa, "w3": w3p, "bias": bias}


@jax.jit
def actor_critic_forward(x_nchw, packed):
    x = jnp.transpose(x_nchw, (0, 2, 3, 1))                              # NCHW -> NHWC
    B = x.shape[0]
    patches, OH, OW = im2col(x, CONV_K, CONV_STRIDE, CONV_PAD)           # (B, OH*OW, K*K*C)
    kkc = patches.shape[-1]
    kkc_pad = ((kkc + 7) // 8) * 8
    patches = jnp.pad(patches, ((0, 0), (0, 0), (0, kkc_pad - kkc)))

    R = PATCH_GROUP
    assert (OH * OW) % R == 0
    G = (OH * OW) // R
    B_pad = ((B + 7) // 8) * 8
    # rows ordered (group, batch); batch padded to a sublane multiple so every in-kernel slice
    # is (8,128)-tile aligned.
    lr = patches.reshape(B, G, R * kkc_pad)
    lr = jnp.transpose(lr, (1, 0, 2))
    lr = jnp.pad(lr, ((0, 0), (0, B_pad - B), (0, 0)))
    lr = lr.reshape(G * B_pad, R * kkc_pad)

    kernel = functools.partial(
        fused_actor_critic_kernel,
        groups=G, b_pad=B_pad, wcf_rows=R * kkc_pad, gw=R * CONV_OC,
        num_actions=NUM_ACTIONS)

    out = pl.pallas_call(
        kernel,
        out_shape=jax.ShapeDtypeStruct((B_pad, OUT_W), jnp.float32),
        in_specs=[_vmem_spec()] * 4,
        out_specs=_vmem_spec(),
    )(lr, packed["wa"], packed["w3"], packed["bias"])

    logp = out[:B, :NUM_ACTIONS]
    value = out[:B, NUM_ACTIONS:NUM_ACTIONS + 1]
    return logp, value


def reference_forward(x_nchw, params):
    """Pure-JAX reference for correctness checking."""
    x = jnp.transpose(x_nchw, (0, 2, 3, 1))
    B = x.shape[0]
    patches, OH, OW = im2col(x, CONV_K, CONV_STRIDE, CONV_PAD)
    patches2 = patches.reshape(B * OH * OW, -1)
    conv_out = jnp.maximum(patches2 @ params["conv_w"] + params["conv_b"], 0.0)
    enc = conv_out.reshape(B, OH * OW * CONV_OC)

    h = jnp.maximum(enc @ params["aw1"] + params["ab1"], 0.0)
    h = jnp.maximum(h @ params["aw2"] + params["ab2"], 0.0)
    logits = h @ params["aw3"] + params["ab3"]
    logp = jax.nn.log_softmax(logits, axis=1)

    g = jnp.maximum(enc @ params["cw1"] + params["cb1"], 0.0)
    g = jnp.maximum(g @ params["cw2"] + params["cb2"], 0.0)
    value = g @ params["cw3"] + params["cb3"]
    return logp, value


if __name__ == "__main__":
    key = jax.random.PRNGKey(0)
    B, C, H, W = 2, 4, 16, 16
    x = jax.random.normal(jax.random.fold_in(key, 99), (B, C, H, W), jnp.float32)

    OH = (H + 2 * CONV_PAD - CONV_K) // CONV_STRIDE + 1
    OW = (W + 2 * CONV_PAD - CONV_K) // CONV_STRIDE + 1
    enc_vec_size = OH * OW * CONV_OC                        # 8*8*8 = 512

    params = init_params(key, C, enc_vec_size)
    packed = pack_params(params, OH, OW)

    logp, value = actor_critic_forward(x, packed)
    jax.block_until_ready((logp, value))

    ref_logp, ref_value = reference_forward(x, params)
    assert logp.shape == (B, NUM_ACTIONS) and value.shape == (B, 1)
    assert jnp.allclose(logp, ref_logp, atol=1e-4, rtol=1e-4)
    assert jnp.allclose(value, ref_value, atol=1e-4, rtol=1e-4)
    # log-softmax rows sum (in prob space) to 1
    assert jnp.allclose(jnp.sum(jnp.exp(logp), axis=1), jnp.ones((B,)), atol=1e-4)

    print("KERNEL_OK")
</pallas_src>

<mosaic_0001>
module attributes {stable_mosaic.version = 11 : i64} {
  func.func @fused_actor_critic_kernel(%arg0: memref<64x320xf32, #tpu.memory_space<vmem>>, %arg1: memref<896x64xf32, #tpu.memory_space<vmem>>, %arg2: memref<64x128xf32, #tpu.memory_space<vmem>>, %arg3: memref<8x128xf32, #tpu.memory_space<vmem>>, %arg4: memref<8x128xf32, #tpu.memory_space<vmem>>) attributes {dimension_semantics = [], scalar_prefetch = 0 : i64, scratch_operands = 0 : i64, tpu.core_type = #tpu.core_type<tc>} {
    %c0 = arith.constant 0 : index
    %c0_0 = arith.constant 0 : index
    %0 = vector.load %arg3[%c0, %c0_0] : memref<8x128xf32, #tpu.memory_space<vmem>>, vector<1x64xf32>
    %c1 = arith.constant 1 : index
    %c0_1 = arith.constant 0 : index
    %1 = vector.load %arg3[%c1, %c0_1] : memref<8x128xf32, #tpu.memory_space<vmem>>, vector<1x64xf32>
    %c2 = arith.constant 2 : index
    %c0_2 = arith.constant 0 : index
    %2 = vector.load %arg3[%c2, %c0_2] : memref<8x128xf32, #tpu.memory_space<vmem>>, vector<1x64xf32>
    %c3 = arith.constant 3 : index
    %c0_3 = arith.constant 0 : index
    %3 = vector.load %arg3[%c3, %c0_3] : memref<8x128xf32, #tpu.memory_space<vmem>>, vector<1x128xf32>
    %c0_4 = arith.constant 0 : index
    %c0_5 = arith.constant 0 : index
    %4 = vector.load %arg1[%c0_4, %c0_5] : memref<896x64xf32, #tpu.memory_space<vmem>>, vector<320x64xf32>
    %c0_6 = arith.constant 0 : index
    %c0_7 = arith.constant 0 : index
    %5 = vector.load %arg0[%c0_6, %c0_7] : memref<64x320xf32, #tpu.memory_space<vmem>>, vector<64x320xf32>
    %cst = arith.constant dense<0.000000e+00> : vector<64x64xf32>
    %6 = tpu.matmul %5, %4, %cst {dimension_numbers = #tpu.dot_dimension_numbers<[1], [0], [0], [1], [0, 0, 1, 1], [], []>} : vector<64x320xf32>, vector<320x64xf32>, vector<64x64xf32> -> vector<64x64xf32>
    %7 = vector.broadcast %0 : vector<1x64xf32> to vector<64x64xf32>
    %8 = arith.addf %6, %7 : vector<64x64xf32>
    %cst_8 = arith.constant 0.000000e+00 : f32
    %9 = vector.broadcast %cst_8 : f32 to vector<64x64xf32>
    %10 = arith.maximumf %8, %9 : vector<64x64xf32>
    %cst_9 = arith.constant 0.000000e+00 : f32
    %11 = vector.broadcast %cst_9 : f32 to vector<8x64xf32>
    %12 = vector.extract_strided_slice %10 {offsets = [0, 0], sizes = [8, 64], strides = [1, 1]} : vector<64x64xf32> to vector<8x64xf32>
    %c320 = arith.constant 320 : index
    %c0_10 = arith.constant 0 : index
    %13 = vector.load %arg1[%c320, %c0_10] : memref<896x64xf32, #tpu.memory_space<vmem>>, vector<64x64xf32>
    %cst_11 = arith.constant dense<0.000000e+00> : vector<8x64xf32>
    %14 = tpu.matmul %12, %13, %cst_11 {dimension_numbers = #tpu.dot_dimension_numbers<[1], [0], [0], [1], [0, 0, 1, 1], [], []>} : vector<8x64xf32>, vector<64x64xf32>, vector<8x64xf32> -> vector<8x64xf32>
    %15 = arith.addf %11, %14 : vector<8x64xf32>
    %16 = vector.extract_strided_slice %10 {offsets = [8, 0], sizes = [8, 64], strides = [1, 1]} : vector<64x64xf32> to vector<8x64xf32>
    %c384 = arith.constant 384 : index
    %c0_12 = arith.constant 0 : index
    %17 = vector.load %arg1[%c384, %c0_12] : memref<896x64xf32, #tpu.memory_space<vmem>>, vector<64x64xf32>
    %cst_13 = arith.constant dense<0.000000e+00> : vector<8x64xf32>
    %18 = tpu.matmul %16, %17, %cst_13 {dimension_numbers = #tpu.dot_dimension_numbers<[1], [0], [0], [1], [0, 0, 1, 1], [], []>} : vector<8x64xf32>, vector<64x64xf32>, vector<8x64xf32> -> vector<8x64xf32>
    %19 = arith.addf %15, %18 : vector<8x64xf32>
    %20 = vector.extract_strided_slice %10 {offsets = [16, 0], sizes = [8, 64], strides = [1, 1]} : vector<64x64xf32> to vector<8x64xf32>
    %c448 = arith.constant 448 : index
    %c0_14 = arith.constant 0 : index
    %21 = vector.load %arg1[%c448, %c0_14] : memref<896x64xf32, #tpu.memory_space<vmem>>, vector<64x64xf32>
    %cst_15 = arith.constant dense<0.000000e+00> : vector<8x64xf32>
    %22 = tpu.matmul %20, %21, %cst_15 {dimension_numbers = #tpu.dot_dimension_numbers<[1], [0], [0], [1], [0, 0, 1, 1], [], []>} : vector<8x64xf32>, vector<64x64xf32>, vector<8x64xf32> -> vector<8x64xf32>
    %23 = arith.addf %19, %22 : vector<8x64xf32>
    %24 = vector.extract_strided_slice %10 {offsets = [24, 0], sizes = [8, 64], strides = [1, 1]} : vector<64x64xf32> to vector<8x64xf32>
    %c512 = arith.constant 512 : index
    %c0_16 = arith.constant 0 : index
    %25 = vector.load %arg1[%c512, %c0_16] : memref<896x64xf32, #tpu.memory_space<vmem>>, vector<64x64xf32>
    %cst_17 = arith.constant dense<0.000000e+00> : vector<8x64xf32>
    %26 = tpu.matmul %24, %25, %cst_17 {dimension_numbers = #tpu.dot_dimension_numbers<[1], [0], [0], [1], [0, 0, 1, 1], [], []>} : vector<8x64xf32>, vector<64x64xf32>, vector<8x64xf32> -> vector<8x64xf32>
    %27 = arith.addf %23, %26 : vector<8x64xf32>
    %28 = vector.extract_strided_slice %10 {offsets = [32, 0], sizes = [8, 64], strides = [1, 1]} : vector<64x64xf32> to vector<8x64xf32>
    %c576 = arith.constant 576 : index
    %c0_18 = arith.constant 0 : index
    %29 = vector.load %arg1[%c576, %c0_18] : memref<896x64xf32, #tpu.memory_space<vmem>>, vector<64x64xf32>
    %cst_19 = arith.constant dense<0.000000e+00> : vector<8x64xf32>
    %30 = tpu.matmul %28, %29, %cst_19 {dimension_numbers = #tpu.dot_dimension_numbers<[1], [0], [0], [1], [0, 0, 1, 1], [], []>} : vector<8x64xf32>, vector<64x64xf32>, vector<8x64xf32> -> vector<8x64xf32>
    %31 = arith.addf %27, %30 : vector<8x64xf32>
    %32 = vector.extract_strided_slice %10 {offsets = [40, 0], sizes = [8, 64], strides = [1, 1]} : vector<64x64xf32> to vector<8x64xf32>
    %c640 = arith.constant 640 : index
    %c0_20 = arith.constant 0 : index
    %33 = vector.load %arg1[%c640, %c0_20] : memref<896x64xf32, #tpu.memory_space<vmem>>, vector<64x64xf32>
    %cst_21 = arith.constant dense<0.000000e+00> : vector<8x64xf32>
    %34 = tpu.matmul %32, %33, %cst_21 {dimension_numbers = #tpu.dot_dimension_numbers<[1], [0], [0], [1], [0, 0, 1, 1], [], []>} : vector<8x64xf32>, vector<64x64xf32>, vector<8x64xf32> -> vector<8x64xf32>
    %35 = arith.addf %31, %34 : vector<8x64xf32>
    %36 = vector.extract_strided_slice %10 {offsets = [48, 0], sizes = [8, 64], strides = [1, 1]} : vector<64x64xf32> to vector<8x64xf32>
    %c704 = arith.constant 704 : index
    %c0_22 = arith.constant 0 : index
    %37 = vector.load %arg1[%c704, %c0_22] : memref<896x64xf32, #tpu.memory_space<vmem>>, vector<64x64xf32>
    %cst_23 = arith.constant dense<0.000000e+00> : vector<8x64xf32>
    %38 = tpu.matmul %36, %37, %cst_23 {dimension_numbers = #tpu.dot_dimension_numbers<[1], [0], [0], [1], [0, 0, 1, 1], [], []>} : vector<8x64xf32>, vector<64x64xf32>, vector<8x64xf32> -> vector<8x64xf32>
    %39 = arith.addf %35, %38 : vector<8x64xf32>
    %40 = vector.extract_strided_slice %10 {offsets = [56, 0], sizes = [8, 64], strides = [1, 1]} : vector<64x64xf32> to vector<8x64xf32>
    %c768 = arith.constant 768 : index
    %c0_24 = arith.constant 0 : index
    %41 = vector.load %arg1[%c768, %c0_24] : memref<896x64xf32, #tpu.memory_space<vmem>>, vector<64x64xf32>
    %cst_25 = arith.constant dense<0.000000e+00> : vector<8x64xf32>
    %42 = tpu.matmul %40, %41, %cst_25 {dimension_numbers = #tpu.dot_dimension_numbers<[1], [0], [0], [1], [0, 0, 1, 1], [], []>} : vector<8x64xf32>, vector<64x64xf32>, vector<8x64xf32> -> vector<8x64xf32>
    %43 = arith.addf %39, %42 : vector<8x64xf32>
    %44 = vector.broadcast %1 : vector<1x64xf32> to vector<8x64xf32>
    %45 = arith.addf %43, %44 : vector<8x64xf32>
    %cst_26 = arith.constant 0.000000e+00 : f32
    %46 = vector.broadcast %cst_26 : f32 to vector<8x64xf32>
    %47 = arith.maximumf %45, %46 : vector<8x64xf32>
    %c832 = arith.constant 832 : index
    %c0_27 = arith.constant 0 : index
    %48 = vector.load %arg1[%c832, %c0_27] : memref<896x64xf32, #tpu.memory_space<vmem>>, vector<64x64xf32>
    %cst_28 = arith.constant dense<0.000000e+00> : vector<8x64xf32>
    %49 = tpu.matmul %47, %48, %cst_28 {dimension_numbers = #tpu.dot_dimension_numbers<[1], [0], [0], [1], [0, 0, 1, 1], [], []>} : vector<8x64xf32>, vector<64x64xf32>, vector<8x64xf32> -> vector<8x64xf32>
    %50 = vector.broadcast %2 : vector<1x64xf32> to vector<8x64xf32>
    %51 = arith.addf %49, %50 : vector<8x64xf32>
    %cst_29 = arith.constant 0.000000e+00 : f32
    %52 = vector.broadcast %cst_29 : f32 to vector<8x64xf32>
    %53 = arith.maximumf %51, %52 : vector<8x64xf32>
    %c0_30 = arith.constant 0 : index
    %c0_31 = arith.constant 0 : index
    %54 = vector.load %arg2[%c0_30, %c0_31] : memref<64x128xf32, #tpu.memory_space<vmem>>, vector<64x128xf32>
    %cst_32 = arith.constant dense<0.000000e+00> : vector<8x128xf32>
    %55 = tpu.matmul %53, %54, %cst_32 {dimension_numbers = #tpu.dot_dimension_numbers<[1], [0], [0], [1], [0, 0, 1, 1], [], []>} : vector<8x64xf32>, vector<64x128xf32>, vector<8x128xf32> -> vector<8x128xf32>
    %56 = vector.broadcast %3 : vector<1x128xf32> to vector<8x128xf32>
    %57 = arith.addf %55, %56 : vector<8x128xf32>
    %58 = tpu.iota {dimensions = array<i32: 1>} : vector<8x128xi32>
    %c6_i32 = arith.constant 6 : i32
    %59 = vector.broadcast %c6_i32 : i32 to vector<8x128xi32>
    %60 = arith.cmpi slt, %58, %59 : vector<8x128xi32>
    %cst_33 = arith.constant 0xFF800000 : f32
    %61 = vector.broadcast %cst_33 : f32 to vector<8x128xf32>
    %62 = arith.select %60, %57, %61 : vector<8x128xi1>, vector<8x128xf32>
    %cst_34 = arith.constant dense<0xFF800000> : vector<8xf32>
    %63 = vector.multi_reduction <maximumf>, %62, %cst_34 [1] : vector<8x128xf32> to vector<8xf32>
    %64 = vector.shape_cast %63 : vector<8xf32> to vector<8x1xf32>
    %65 = vector.broadcast %64 : vector<8x1xf32> to vector<8x128xf32>
    %66 = arith.subf %57, %65 : vector<8x128xf32>
    %cst_35 = arith.constant 0.000000e+00 : f32
    %67 = vector.broadcast %cst_35 : f32 to vector<8x128xf32>
    %68 = arith.select %60, %66, %67 : vector<8x128xi1>, vector<8x128xf32>
    %69 = math.exp %68 : vector<8x128xf32>
    %cst_36 = arith.constant 0.000000e+00 : f32
    %70 = vector.broadcast %cst_36 : f32 to vector<8x128xf32>
    %71 = arith.select %60, %69, %70 : vector<8x128xi1>, vector<8x128xf32>
    %cst_37 = arith.constant dense<0.000000e+00> : vector<8xf32>
    %72 = vector.multi_reduction <add>, %71, %cst_37 [1] : vector<8x128xf32> to vector<8xf32>
    %73 = vector.shape_cast %72 : vector<8xf32> to vector<8x1xf32>
    %74 = math.log %73 : vector<8x1xf32>
    %75 = vector.broadcast %74 : vector<8x1xf32> to vector<8x128xf32>
    %76 = arith.subf %66, %75 : vector<8x128xf32>
    %77 = arith.select %60, %76, %57 : vector<8x128xi1>, vector<8x128xf32>
    %c0_38 = arith.constant 0 : index
    %c0_39 = arith.constant 0 : index
    %78 = vector.load %arg4[%c0_38, %c0_39] : memref<8x128xf32, #tpu.memory_space<vmem>>, vector<8x128xf32>
    tpu.vector_store %arg4[%c0_38, %c0_39], %77 {strides = array<i32>} : memref<8x128xf32, #tpu.memory_space<vmem>>, vector<8x128xf32>,
    return
  }
}

</mosaic_0001>

<bundles_post_ra>
// kernel: actor_critic_forward.1
= control target key start
LH: loop header
LB: loop body
LE: loop exit
PB: predicated region body
PF: predicated region fallthrough
CT: control target
= control target key end

     0   :  { %vm89_vm0 = vcmask 523264   ;;  %v1762_v63 = vmov 0.0|0.0   ;;  %vm1763_vm1 = vmmov 0   ;;  %s2350_s1 = inlined_call_operand.vmem [shape: f32[896,64], index: 1, kind: input, shape index: {}]   ;;  %s2351_s0 = inlined_call_operand.vmem [shape: f32[64,320], index: 0, kind: input, shape index: {}]   ;;  %s2352_s3 = inlined_call_operand.vmem [shape: f32[8,128], index: 3, kind: input, shape index: {}]   ;;  %s2353_s2 = inlined_call_operand.vmem [shape: f32[64,128], index: 2, kind: input, shape index: {}]   ;;  %s2354_s4 = inlined_call_operand.vmem [shape: f32[8,128], index: 4, kind: output, shape index: {}]  }
   0x1   :  { %v37_v0 = vld [vmem:[%s2350_s1 + $0x80] sm:$0xff]  ;;  %v38_v1 = vld [vmem:[%s2350_s1 + $0x88] sm:$0xff]  ;;  %v39_v5 = vld [vmem:[%s2350_s1 + $0x90] sm:$0xff] }
   0x2   :  { %v21_v2 = vld [vmem:[%s2350_s1] sm:$0xff]  ;;  %v1587_v3 = vpack.c.bf16 %v38_v1, %v37_v0  ;;  %v22_v4 = vld [vmem:[%s2350_s1 + $0x8] sm:$0xff]  ;;  %v40_v6 = vld [vmem:[%s2350_s1 + $0x98] sm:$0xff] }
   0x3   :  { %v1589_v7 = vpack.c.bf16 %v22_v4, %v21_v2  ;;  %v1591_v8 = vpack.c.bf16 %v40_v6, %v39_v5  ;;  %v23_v9 = vld [vmem:[%s2350_s1 + $0x10] sm:$0xff]  ;;  %v24_v10 = vld [vmem:[%s2350_s1 + $0x18] sm:$0xff]  ;;  %v41_v11 = vld [vmem:[%s2350_s1 + $0xa0] sm:$0xff] }
   0x4   :  { %1588 = vmatprep.subr.bf16.mxu0 %v1587_v3  ;;  %v42_v12 = vld [vmem:[%s2350_s1 + $0xa8] sm:$0xff]  ;;  %v1593_v13 = vpack.c.bf16 %v24_v10, %v23_v9  ;;  %v25_v15 = vld [vmem:[%s2350_s1 + $0x20] sm:$0xff]  ;;  %v43_v17 = vld [vmem:[%s2350_s1 + $0xb0] sm:$0xff] }
   0x5   :  { %1590 = vmatpush3.bf16.msra.mxu0 %v1589_v7  ;;  %v1595_v14 = vpack.c.bf16 %v42_v12, %v41_v11  ;;  %v26_v16 = vld [vmem:[%s2350_s1 + $0x28] sm:$0xff]  ;;  %v44_v18 = vld [vmem:[%s2350_s1 + $0xb8] sm:$0xff]  ;;  %v53_v19 = vld [vmem:[%s2350_s1 + $0x100] sm:$0xff] }
   0x6   :  { %1592 = vmatprep.subr.bf16.mxu0 %v1591_v8  ;;  %v54_v20 = vld [vmem:[%s2350_s1 + $0x108] sm:$0xff]  ;;  %v1597_v21 = vpack.c.bf16 %v26_v16, %v25_v15  ;;  %v27_v22 = vld [vmem:[%s2350_s1 + $0x30] sm:$0xff]  ;;  %v1599_v24 = vpack.c.bf16 %v44_v18, %v43_v17  ;;  %v28_v25 = vld [vmem:[%s2350_s1 + $0x38] sm:$0xff] }
   0x7   :  { %v1619_v23 = vpack.c.bf16 %v54_v20, %v53_v19  ;;  %v55_v26 = vld [vmem:[%s2350_s1 + $0x110] sm:$0xff]  ;;  %v56_v27 = vld [vmem:[%s2350_s1 + $0x118] sm:$0xff]  ;;  %v45_v28 = vld [vmem:[%s2350_s1 + $0xc0] sm:$0xff]  ;;  %v1601_v33 = vpack.c.bf16 %v28_v25, %v27_v22 }
   0x8   :  { %v46_v29 = vld [vmem:[%s2350_s1 + $0xc8] sm:$0xff]  ;;  %v1623_v30 = vpack.c.bf16 %v56_v27, %v55_v26  ;;  %v57_v31 = vld [vmem:[%s2350_s1 + $0x120] sm:$0xff]  ;;  %v59_v39 = vld [vmem:[%s2350_s1 + $0x130] sm:$0xff] }
   0x9   :  { %1594 = vmatpush3.bf16.msra.mxu0 %v1593_v13  ;;  %1620 = vmatprep.subr.bf16.mxu1 %v1619_v23  ;;  %v58_v32 = vld [vmem:[%s2350_s1 + $0x128] sm:$0xff]  ;;  %v29_v34 = vld [vmem:[%s2350_s1 + $0x40] sm:$0xff]  ;;  %v1603_v37 = vpack.c.bf16 %v46_v29, %v45_v28  ;;  %v60_v40 = vld [vmem:[%s2350_s1 + $0x138] sm:$0xff] }
   0xa   :  { %1596 = vmatprep.subr.bf16.mxu0 %v1595_v14  ;;  %1622 = vmatpush3.bf16.msra.mxu1 %v1619_v23  ;;  %v1627_v35 = vpack.c.bf16 %v58_v32, %v57_v31  ;;  %v62_v36 = vld [vmem:[%s2351_s0 + $0x8] sm:$0xff]  ;;  %v47_v41 = vld [vmem:[%s2350_s1 + $0xd0] sm:$0xff]  ;;  %v48_v42 = vld [vmem:[%s2350_s1 + $0xd8] sm:$0xff]  ;;  %v1631_v45 = vpack.c.bf16 %v60_v40, %v59_v39 }
   0xb   :  { %1624 = vmatprep.subr.bf16.mxu1 %v1623_v30  ;;  %v30_v38 = vld [vmem:[%s2350_s1 + $0x48] sm:$0xff]  ;;  %178 = vmatprep.mubr.f32.mxu0 %v62_v36  ;;  %v63_v43 = vld [vmem:[%s2351_s0 + $0x10] sm:$0xff]  ;;  %v1607_v46 = vpack.c.bf16 %v48_v42, %v47_v41  ;;  %v32_v48 = vld [vmem:[%s2350_s1 + $0x58] sm:$0xff]  ;;  %v1764_v36 = vmov 0.0  }
   0xc   :  { %1385 = vmatprep.mubr.msk.f32.mxu1 %vm89_vm0, %v63_v43  ;;  %v1605_v44 = vpack.c.bf16 %v30_v38, %v29_v34  ;;  %v31_v47 = vld [vmem:[%s2350_s1 + $0x50] sm:$0xff]  ;;  %v49_v49 = vld [vmem:[%s2350_s1 + $0xe0] sm:$0xff]  ;;  %v50_v50 = vld [vmem:[%s2350_s1 + $0xe8] sm:$0xff] }
   0xd   :  { %1598 = vmatpush3.bf16.msra.mxu0 %v1597_v21  ;;  %v1609_v51 = vpack.c.bf16 %v32_v48, %v31_v47  ;;  %v33_v52 = vld [vmem:[%s2350_s1 + $0x60] sm:$0xff]  ;;  %v1611_v53 = vpack.c.bf16 %v50_v50, %v49_v49  ;;  %v34_v54 = vld [vmem:[%s2350_s1 + $0x68] sm:$0xff]  ;;  %v51_v57 = vld [vmem:[%s2350_s1 + $0xf0] sm:$0xff] }
   0xe   :  { %1600 = vmatprep.subr.bf16.mxu0 %v1599_v24  ;;  %1626 = vmatpush3.bf16.msra.mxu1 %v1623_v30  ;;  %v340_v55 = vld [vmem:[%s2350_s1 + $0x180] sm:$0xff]  ;;  %v341_v56 = vld [vmem:[%s2350_s1 + $0x188] sm:$0xff]  ;;  %v52_v58 = vld [vmem:[%s2350_s1 + $0xf8] sm:$0xff]  ;;  %v1613_v61 = vpack.c.bf16 %v34_v54, %v33_v52 }
   0xf   :  { %1628 = vmatprep.subr.bf16.mxu1 %v1627_v35  ;;  %v66_v59 = vld [vmem:[%s2351_s0 + $0x28] sm:$0xff]  ;;  %v1636_v60 = vpack.c.bf16 %v341_v56, %v340_v55  ;;  %v69_v62 = vld [vmem:[%s2351_s0 + $0x40] sm:$0xff]  ;;  %v1615_v0 = vpack.c.bf16 %v52_v58, %v51_v57  ;;  %v35_v1 = vld [vmem:[%s2350_s1 + $0x70] sm:$0xff] }
  0x10   :  { %v36_v2 = vld [vmem:[%s2350_s1 + $0x78] sm:$0xff]  ;;  %v75_v5 = vld [vmem:[%s2351_s0 + $0x70] sm:$0xff]  ;;  %v78_v6 = vld [vmem:[%s2351_s0 + $0x88] sm:$0xff] }
  0x11   :  { %1602 = vmatpush3.bf16.msra.mxu0 %v1601_v33  ;;  %v72_v3 = vld [vmem:[%s2351_s0 + $0x58] sm:$0xff]  ;;  %v1617_v4 = vpack.c.bf16 %v36_v2, %v35_v1  ;;  %v61_v7 = vld [vmem:[%s2351_s0] sm:$0xff]  ;;  %v67_v13 = vld [vmem:[%s2351_s0 + $0x30] sm:$0xff] }
  0x12   :  { %1604 = vmatprep.subr.bf16.mxu0 %v1603_v37  ;;  %1630 = vmatpush3.bf16.msra.mxu1 %v1627_v35  ;;  %v81_v8 = vld [vmem:[%s2351_s0 + $0xa0] sm:$0xff]  ;;  %v84_v10 = vld [vmem:[%s2351_s0 + $0xb8] sm:$0xff]  ;;  %v71_v14 = vld [vmem:[%s2351_s0 + $0x50] sm:$0xff] }
  0x13   :  { %1632 = vmatprep.subr.bf16.mxu1 %v1631_v45  ;;  %v65_v9 = vld [vmem:[%s2351_s0 + $0x20] sm:$0xff]  ;;  %v64_v11 = vld [vmem:[%s2351_s0 + $0x18] sm:$0xff]  ;;  %v70_v15 = vld [vmem:[%s2351_s0 + $0x48] sm:$0xff] }
  0x14   :  { %v68_v12 = vld [vmem:[%s2351_s0 + $0x38] sm:$0xff]  ;;  %v74_v16 = vld [vmem:[%s2351_s0 + $0x68] sm:$0xff]  ;;  %v73_v17 = vld [vmem:[%s2351_s0 + $0x60] sm:$0xff] }
  0x15   :  { %1606 = vmatpush3.bf16.msra.mxu0 %v1605_v44  ;;  %v77_v18 = vld [vmem:[%s2351_s0 + $0x80] sm:$0xff]  ;;  %v76_v19 = vld [vmem:[%s2351_s0 + $0x78] sm:$0xff]  ;;  %v79_v21 = vld [vmem:[%s2351_s0 + $0x90] sm:$0xff] }
  0x16   :  { %1608 = vmatprep.subr.bf16.mxu0 %v1607_v46  ;;  %1634 = vmatpush3.bf16.msra.mxu1 %v1631_v45  ;;  %v80_v20 = vld [vmem:[%s2351_s0 + $0x98] sm:$0xff]  ;;  %v83_v22 = vld [vmem:[%s2351_s0 + $0xb0] sm:$0xff]  ;;  %v82_v23 = vld [vmem:[%s2351_s0 + $0xa8] sm:$0xff] }
  0x17   :  { %1635 = vmatprep.subr.bf16.mxu1 %v1762_v63  ;;  %v342_v24 = vld [vmem:[%s2350_s1 + $0x190] sm:$0xff]  ;;  %v343_v25 = vld [vmem:[%s2350_s1 + $0x198] sm:$0xff]  ;;  %v344_v27 = vld [vmem:[%s2350_s1 + $0x1a0] sm:$0xff] }
  0x18   :  { %v1639_v26 = vpack.c.bf16 %v343_v25, %v342_v24  ;;  %v345_v28 = vld [vmem:[%s2350_s1 + $0x1a8] sm:$0xff]  ;;  %v346_v30 = vld [vmem:[%s2350_s1 + $0x1b0] sm:$0xff]  ;;  %v347_v31 = vld [vmem:[%s2350_s1 + $0x1b8] sm:$0xff] }
  0x19   :  { %1610 = vmatpush3.bf16.msra.mxu0 %v1609_v51  ;;  %1386 = vmatmul.mubr.msk.f32.vlgmr.msra.gmra.mrb[0].mxu1 %vm89_vm0, %v66_v59  ;;  %v1642_v29 = vpack.c.bf16 %v345_v28, %v344_v27  ;;  %v1645_v32 = vpack.c.bf16 %v347_v31, %v346_v30  ;;  %v494_v33 = vld [vmem:[%s2350_s1 + $0x1c0] sm:$0xff]  ;;  %v495_v34 = vld [vmem:[%s2350_s1 + $0x1c8] sm:$0xff]  ;;  %v496_v37 = vld [vmem:[%s2350_s1 + $0x1d0] sm:$0xff] }
  0x1a   :  { %1612 = vmatprep.subr.bf16.mxu0 %v1611_v53  ;;  %1388 = vmatprep.mubr.msk.f32.mxu1 %vm89_vm0, %v69_v62  ;;  %v1660_v35 = vpack.c.bf16 %v495_v34, %v494_v33  ;;  %v497_v38 = vld [vmem:[%s2350_s1 + $0x1d8] sm:$0xff]  ;;  %v498_v40 = vld [vmem:[%s2350_s1 + $0x1e0] sm:$0xff]  ;;  %v499_v41 = vld [vmem:[%s2350_s1 + $0x1e8] sm:$0xff] }
  0x1b   :  { %1637 = vmatpush3.bf16.msra.mxu1 %v1636_v60  ;;  %v1663_v39 = vpack.c.bf16 %v497_v38, %v496_v37  ;;  %v1666_v42 = vpack.c.bf16 %v499_v41, %v498_v40  ;;  %v500_v43 = vld [vmem:[%s2350_s1 + $0x1f0] sm:$0xff]  ;;  %v501_v44 = vld [vmem:[%s2350_s1 + $0x1f8] sm:$0xff]  ;;  %v2057_v54 = vld [vmem:[%s2352_s3] ss:$0 sm:$0xff] }
  0x1c   :  { %1638 = vmatprep.subr.bf16.mxu1 %v1762_v63  ;;  %v1669_v45 = vpack.c.bf16 %v501_v44, %v500_v43  ;;  %v332_v1 = vld [vmem:[%s2350_s1 + $0x140] sm:$0xff]  ;;  %v333_v2 = vld [vmem:[%s2350_s1 + $0x148] sm:$0xff]  ;;  %v660_v24 = vld [vmem:[%s2350_s1 + $0x250] sm:$0xff] }
  0x1d   :  { %1614 = vmatpush3.bf16.msra.mxu0 %v1613_v61  ;;  %1389 = vmatmul.mubr.msk.f32.gmra.mrb[2].mxu1 %vm89_vm0, %v72_v3  ;;  %v661_v25 = vld [vmem:[%s2350_s1 + $0x258] sm:$0xff]  ;;  %v338_v31 = vld [vmem:[%s2350_s1 + $0x170] sm:$0xff]  ;;  %v662_v34 = vld [vmem:[%s2350_s1 + $0x260] sm:$0xff] }
  0x1e   :  { %1616 = vmatprep.subr.bf16.mxu0 %v1615_v0  ;;  %1391 = vmatprep.mubr.msk.f32.mxu1 %vm89_vm0, %v75_v5  ;;  %v339_v33 = vld [vmem:[%s2350_s1 + $0x178] sm:$0xff]  ;;  %v576_v44 = vld [vmem:[%s2350_s1 + $0x200] sm:$0xff] }
  0x1f   :  { %1640 = vmatpush3.bf16.msra.mxu1 %v1639_v26 }
  0x20   :  { %1641 = vmatprep.subr.bf16.mxu1 %v1762_v63 }
  0x21   :  { %1618 = vmatpush3.bf16.msra.mxu0 %v1617_v4  ;;  %1392 = vmatmul.mubr.msk.f32.gmra.mrb[4].mxu1 %vm89_vm0, %v78_v6 }
  0x22   :  { %1659 = vmatprep.subr.bf16.mxu0 %v1762_v63  ;;  %1394 = vmatprep.mubr.msk.f32.mxu1 %vm89_vm0, %v81_v8  ;;  %v334_v8 = vld [vmem:[%s2350_s1 + $0x150] sm:$0xff] }
  0x23   :  { %1643 = vmatpush3.bf16.msra.mxu1 %v1642_v29 }
  0x24   :  { %179 = vmatmul.mubr.f32.vlgmr.msra.gmra.mrb[0].mxu0 %v61_v7  ;;  %1644 = vmatprep.subr.bf16.mxu1 %v1762_v63  ;;  %v1648_v7 = vpack.c.bf16 %v333_v2, %v332_v1  ;;  %v823_v1 = vld [vmem:[%s2350_s1 + $0x2c8] sm:$0xff] }
  0x25   :  { %183 = vmatprep.mubr.f32.mxu0 %v65_v9  ;;  %1395 = vmatmul.mubr.msk.f32.gmra.mrb[6].mxu1 %vm89_vm0, %v84_v10  ;;  %v335_v10 = vld [vmem:[%s2350_s1 + $0x158] sm:$0xff] }
  0x26   :  { %1413 = vmatprep.mubr.msk.f32.mxu1 %vm1763_vm1, %v1764_v36  ;;  %1661 = vmatpush3.bf16.msra.mxu0 %v1660_v35  ;;  %v663_v35 = vld [vmem:[%s2350_s1 + $0x268] sm:$0xff] }
  0x27   :  { %1646 = vmatpush3.bf16.msra.mxu1 %v1645_v32  ;;  %1662 = vmatprep.subr.bf16.mxu0 %v1762_v63  ;;  %v1687_v32 = vpack.c.bf16 %v661_v25, %v660_v24  ;;  %v1690_v43 = vpack.c.bf16 %v663_v35, %v662_v34  ;;  %v742_v25 = vld [vmem:[%s2350_s1 + $0x290] sm:$0xff]  ;;  %v747_v34 = vld [vmem:[%s2350_s1 + $0x2b8] sm:$0xff] }
  0x28   :  { %184 = vmatmul.mubr.f32.gmra.mrb[2].mxu0 %v64_v11  ;;  %1647 = vmatprep.subr.bf16.mxu1 %v1762_v63 }
  0x29   :  { %188 = vmatprep.mubr.f32.mxu0 %v68_v12  ;;  %v658_v12 = vld [vmem:[%s2350_s1 + $0x240] sm:$0xff] }
  0x2a   :  { %1664 = vmatpush3.bf16.msra.mxu0 %v1663_v39 }
  0x2b   :  { %1665 = vmatprep.subr.bf16.mxu0 %v1762_v63 }
  0x2c   :  { %189 = vmatmul.mubr.f32.gmra.mrb[4].mxu0 %v67_v13  ;;  %v659_v13 = vld [vmem:[%s2350_s1 + $0x248] sm:$0xff] }
  0x2d   :  { %193 = vmatprep.mubr.f32.mxu0 %v71_v14 }
  0x2e   :  { %1667 = vmatpush3.bf16.msra.mxu0 %v1666_v42  ;;  %v1657_v42 = vpack.c.bf16 %v339_v33, %v338_v31  ;;  %v745_v31 = vld [vmem:[%s2350_s1 + $0x2a8] sm:$0xff]  ;;  %v746_v33 = vld [vmem:[%s2350_s1 + $0x2b0] sm:$0xff] }
  0x2f   :  { %1668 = vmatprep.subr.bf16.mxu0 %v1762_v63  ;;  %v1705_v35 = vpack.c.bf16 %v747_v34, %v746_v33  ;;  %v1084_v33 = vld [vmem:[%s2353_s2 + $0x30] sm:$0xff]  ;;  %v1085_v34 = vld [vmem:[%s2353_s2 + $0x38] sm:$0xff] }
  0x30   :  { %194 = vmatmul.mubr.f32.gmra.mrb[6].mxu0 %v70_v15 }
  0x31   :  { %198 = vmatprep.mubr.f32.mxu0 %v74_v16 }
  0x32   :  { %1670 = vmatpush3.bf16.msra.mxu0 %v1669_v45  ;;  %v577_v45 = vld [vmem:[%s2350_s1 + $0x208] sm:$0xff] }
  0x33   :  { %1683 = vmatprep.subr.bf16.mxu0 %v1762_v63 }
  0x34   :  { %199 = vmatmul.mubr.f32.gmra.mrb[8].mxu0 %v73_v17 }
  0x35   :  { %203 = vmatprep.mubr.f32.mxu0 %v77_v18  ;;  %v1651_v18 = vpack.c.bf16 %v335_v10, %v334_v8  ;;  %v581_v8 = vld [vmem:[%s2350_s1 + $0x228] sm:$0xff]  ;;  %v824_v10 = vld [vmem:[%s2350_s1 + $0x2d0] sm:$0xff] }
  0x38   :  { %204 = vmatmul.mubr.f32.gmra.mrb[10].mxu0 %v76_v19  ;;  %v336_v19 = vld [vmem:[%s2350_s1 + $0x160] sm:$0xff] }
  0x39   :  { %208 = vmatprep.mubr.f32.mxu0 %v80_v20  ;;  %v1684_v20 = vpack.c.bf16 %v659_v13, %v658_v12 }
  0x3c   :  { %209 = vmatmul.mubr.f32.gmra.mrb[12].mxu0 %v79_v21  ;;  %v337_v21 = vld [vmem:[%s2350_s1 + $0x168] sm:$0xff] }
  0x3d   :  { %213 = vmatprep.mubr.f32.mxu0 %v83_v22  ;;  %v1654_v30 = vpack.c.bf16 %v337_v21, %v336_v19  ;;  %v741_v19 = vld [vmem:[%s2350_s1 + $0x288] sm:$0xff]  ;;  %v828_v21 = vld [vmem:[%s2350_s1 + $0x2f0] sm:$0xff] }
  0x40   :  { %214 = vmatmul.mubr.f32.gmra.mrb[14].mxu0 %v82_v23 }
  0x41   :  { %1451 = vmatprep.mubr.msk.f32.mxu0 %vm1763_vm1, %v1764_v36 }
  0xec   :  { %v1387_v46 = vpop.f32.mrb[0].mxu1 }
  0xed   :  { %v285_v47 = vpop.f32.mrb[1].mxu1 }
  0xf0   :  { %v1390_v48 = vpop.f32.mrb[2].mxu1 }
  0xf1   :  { %v295_v49 = vpop.f32.mrb[3].mxu1 }
  0xf4   :  { %v2052_v50 = vpop.f32.mrb[4].mxu1 }
  0xf5   :  { %v305_v52 = vpop.f32.mrb[5].mxu1 }
  0xf7   :  { %v1239_v51 = vpop.f32.mrb[0].mxu0 }
  0xf8   :  { %v1240_v53 = vpop.f32.mrb[1].mxu0  ;;  %v2059_v56 = vpop.f32.mrb[6].mxu1 }
  0xf9   :  { %v1241_v55 = vadd.f32 %v1240_v53, %v1239_v51  ;;  %v2062_v59 = vpop.f32.mrb[7].mxu1 }
  0xfb   :  { %v1242_v57 = vpop.f32.mrb[2].mxu0  ;;  %v181_v58 = vadd.f32 %v1241_v55, %v2057_v54  ;;  %v1672_v55 = vpack.c.bf16 %v577_v45, %v576_v44  ;;  %v908_v44 = vld [vmem:[%s2350_s1 + $0x320] sm:$0xff]  ;;  %v909_v45 = vld [vmem:[%s2350_s1 + $0x328] sm:$0xff] }
  0xfc   :  { %v1243_v60 = vpop.f32.mrb[3].mxu0 }
  0xfd   :  { %v1244_v61 = vadd.f32 %v1243_v60, %v1242_v57  ;;  %v2064_v62 = vadd.f32 %v285_v47, %v181_v58  ;;  %v578_v58 = vld [vmem:[%s2350_s1 + $0x210] sm:$0xff]  ;;  %v579_v60 = vld [vmem:[%s2350_s1 + $0x218] sm:$0xff] }
  0xff   :  { %v186_v0 = vadd.f32 %v1244_v61, %v2057_v54  ;;  %v1245_v3 = vpop.f32.mrb[4].mxu0  ;;  %v324_v57 = vmax.f32 %v2064_v62, 0.0  ;;  %v822_v62 = vld [vmem:[%s2350_s1 + $0x2c0] sm:$0xff] }
 0x100   :  { %v1246_v4 = vpop.f32.mrb[5].mxu0 }
 0x101   :  { %v291_v5 = vadd.f32 %v1387_v46, %v186_v0  ;;  %v1247_v6 = vadd.f32 %v1246_v4, %v1245_v3 }
 0x103   :  { %v325_v9 = vmax.f32 %v291_v5, 0.0  ;;  %v191_v11 = vadd.f32 %v1247_v6, %v2057_v54  ;;  %v1248_v14 = vpop.f32.mrb[6].mxu0  ;;  %v1675_v5 = vpack.c.bf16 %v579_v60, %v578_v58  ;;  %v995_v58 = vld [vmem:[%s2350_s1 + $0x358] sm:$0xff] }
 0x104   :  { %v1249_v15 = vpop.f32.mrb[7].mxu0 }
 0x105   :  { %1414 = vmatmul.mubr.msk.f32.vlgmr.msra.gmra.mrb[8].mxu1 %vm89_vm0, %v325_v9  ;;  %v296_v16 = vadd.f32 %v295_v49, %v191_v11  ;;  %v1250_v17 = vadd.f32 %v1249_v15, %v1248_v14  ;;  %v665_v49 = vld [vmem:[%s2350_s1 + $0x278] sm:$0xff]  ;;  %v1708_v9 = vpack.c.bf16 %v823_v1, %v822_v62 }
 0x106   :  { %1649 = vmatpush3.bf16.msra.mxu1 %v1648_v7  ;;  %1432 = vmatprep.mubr.msk.f32.mxu1 %vm1763_vm1, %v1764_v36  ;;  %v580_v7 = vld [vmem:[%s2350_s1 + $0x220] sm:$0xff]  ;;  %v825_v11 = vld [vmem:[%s2350_s1 + $0x2d8] sm:$0xff] }
 0x107   :  { %1650 = vmatprep.subr.bf16.mxu1 %v1762_v63  ;;  %v326_v22 = vmax.f32 %v296_v16, 0.0  ;;  %v196_v23 = vadd.f32 %v1250_v17, %v2057_v54  ;;  %v1251_v26 = vpop.f32.mrb[8].mxu0  ;;  %v1678_v13 = vpack.c.bf16 %v581_v8, %v580_v7  ;;  %v583_v14 = vld [vmem:[%s2350_s1 + $0x238] sm:$0xff]  ;;  %v1711_v15 = vpack.c.bf16 %v825_v11, %v824_v10  ;;  %v827_v16 = vld [vmem:[%s2350_s1 + $0x2e8] sm:$0xff]  ;;  %v1082_v8 = vld [vmem:[%s2353_s2 + $0x20] sm:$0xff] }
 0x108   :  { %v1252_v27 = vpop.f32.mrb[9].mxu0  ;;  %v999_v62 = vld [vmem:[%s2350_s1 + $0x378] sm:$0xff] }
 0x109   :  { %1452 = vmatmul.mubr.msk.f32.vlgmr.msra.gmra.mrb[16].mxu0 %vm89_vm0, %v326_v22  ;;  %v2104_v28 = vadd.f32 %v1390_v48, %v196_v23  ;;  %v1253_v29 = vadd.f32 %v1252_v27, %v1251_v26  ;;  %v664_v48 = vld [vmem:[%s2350_s1 + $0x270] sm:$0xff]  ;;  %v829_v22 = vld [vmem:[%s2350_s1 + $0x2f8] sm:$0xff] }
 0x10a   :  { %1652 = vmatpush3.bf16.msra.mxu1 %v1651_v18  ;;  %1685 = vmatpush3.bf16.msra.mxu0 %v1684_v20  ;;  %v740_v18 = vld [vmem:[%s2350_s1 + $0x280] sm:$0xff]  ;;  %v743_v26 = vld [vmem:[%s2350_s1 + $0x298] sm:$0xff]  ;;  %v1717_v27 = vpack.c.bf16 %v829_v22, %v828_v21 }
 0x10b   :  { %1653 = vmatprep.subr.bf16.mxu1 %v1762_v63  ;;  %1686 = vmatprep.subr.bf16.mxu0 %v1762_v63  ;;  %v201_v37 = vadd.f32 %v1253_v29, %v2057_v54  ;;  %v1254_v38 = vpop.f32.mrb[10].mxu0  ;;  %v1696_v23 = vpack.c.bf16 %v741_v19, %v740_v18  ;;  %v327_v24 = vmax.f32 %v2104_v28, 0.0  ;;  %v1699_v29 = vpack.c.bf16 %v743_v26, %v742_v25  ;;  %v744_v28 = vld [vmem:[%s2350_s1 + $0x2a0] sm:$0xff] }
 0x10c   :  { %1489 = vmatprep.mubr.msk.f32.mxu0 %vm1763_vm1, %v1764_v36  ;;  %v1255_v39 = vpop.f32.mrb[11].mxu0 }
 0x10d   :  { %v306_v40 = vadd.f32 %v305_v52, %v201_v37  ;;  %v1256_v41 = vadd.f32 %v1255_v39, %v1254_v38  ;;  %v904_v37 = vld [vmem:[%s2350_s1 + $0x300] sm:$0xff]  ;;  %v905_v38 = vld [vmem:[%s2350_s1 + $0x308] sm:$0xff] }
 0x10e   :  { %1655 = vmatpush3.bf16.msra.mxu1 %v1654_v30  ;;  %1688 = vmatpush3.bf16.msra.mxu0 %v1687_v32  ;;  %v1702_v32 = vpack.c.bf16 %v745_v31, %v744_v28  ;;  %v1720_v39 = vpack.c.bf16 %v905_v38, %v904_v37  ;;  %v1203_v37 = vld [vmem:[%s2352_s3 + $0x2] ss:$0 sm:$0xff] }
 0x10f   :  { %1656 = vmatprep.subr.bf16.mxu1 %v1762_v63  ;;  %1689 = vmatprep.subr.bf16.mxu0 %v1762_v63  ;;  %v206_v46 = vadd.f32 %v1256_v41, %v2057_v54  ;;  %v1257_v47 = vpop.f32.mrb[12].mxu0  ;;  %v328_v6 = vmax.f32 %v306_v40, 0.0  ;;  %v906_v41 = vld [vmem:[%s2350_s1 + $0x310] sm:$0xff] }
 0x110   :  { %v1258_v51 = vpop.f32.mrb[13].mxu0 }
 0x111   :  { %v2139_v52 = vadd.f32 %v2052_v50, %v206_v46  ;;  %v1259_v53 = vadd.f32 %v1258_v51, %v1257_v47  ;;  %v1693_v50 = vpack.c.bf16 %v665_v49, %v664_v48  ;;  %v1726_v46 = vpack.c.bf16 %v909_v45, %v908_v44  ;;  %v910_v47 = vld [vmem:[%s2350_s1 + $0x330] sm:$0xff]  ;;  %v911_v48 = vld [vmem:[%s2350_s1 + $0x338] sm:$0xff]  ;;  %v1205_v44 = vld [vmem:[%s2352_s3 + $0x3] ss:$0 sm:$0xff] }
 0x112   :  { %1658 = vmatpush3.bf16.msra.mxu1 %v1657_v42  ;;  %1691 = vmatpush3.bf16.msra.mxu0 %v1690_v43  ;;  %v907_v42 = vld [vmem:[%s2350_s1 + $0x318] sm:$0xff]  ;;  %v1729_v49 = vpack.c.bf16 %v911_v48, %v910_v47 }
 0x113   :  { %1671 = vmatprep.subr.bf16.mxu1 %v1762_v63  ;;  %1692 = vmatprep.subr.bf16.mxu0 %v1762_v63  ;;  %v211_v61 = vadd.f32 %v1259_v53, %v2057_v54  ;;  %v1260_v0 = vpop.f32.mrb[14].mxu0  ;;  %v329_v40 = vmax.f32 %v2139_v52, 0.0  ;;  %v1723_v43 = vpack.c.bf16 %v907_v42, %v906_v41  ;;  %v992_v52 = vld [vmem:[%s2350_s1 + $0x340] sm:$0xff]  ;;  %v993_v53 = vld [vmem:[%s2350_s1 + $0x348] sm:$0xff]  ;;  %v1163_v42 = vlaneseq }
 0x114   :  { %v1261_v2 = vpop.f32.mrb[15].mxu0 }
 0x115   :  { %1433 = vmatmul.mubr.msk.f32.vlgmr.msra.gmra.mrb[10].mxu1 %vm89_vm0, %v324_v57  ;;  %v316_v3 = vadd.f32 %v2062_v59, %v211_v61  ;;  %v1262_v4 = vadd.f32 %v1261_v2, %v1260_v0  ;;  %v1732_v57 = vpack.c.bf16 %v993_v53, %v992_v52  ;;  %v998_v0 = vld [vmem:[%s2350_s1 + $0x370] sm:$0xff]  ;;  %v1078_v2 = vld [vmem:[%s2353_s2] sm:$0xff] }
 0x116   :  { %1673 = vmatpush3.bf16.msra.mxu1 %v1672_v55  ;;  %1470 = vmatprep.mubr.msk.f32.mxu1 %vm1763_vm1, %v1764_v36  ;;  %v994_v55 = vld [vmem:[%s2350_s1 + $0x350] sm:$0xff]  ;;  %v1741_v1 = vpack.c.bf16 %v999_v62, %v998_v0 }
 0x117   :  { %1674 = vmatprep.subr.bf16.mxu1 %v1762_v63  ;;  %1694 = vmatpush3.bf16.msra.mxu0 %v1693_v50  ;;  %v216_v59 = vadd.f32 %v1262_v4, %v2057_v54  ;;  %v582_v54 = vld [vmem:[%s2350_s1 + $0x230] sm:$0xff]  ;;  %v330_v30 = vmax.f32 %v316_v3, 0.0  ;;  %v1735_v60 = vpack.c.bf16 %v995_v58, %v994_v55  ;;  %v997_v50 = vld [vmem:[%s2350_s1 + $0x368] sm:$0xff] }
 0x118   :  { %1707 = vmatprep.subr.bf16.mxu0 %v1762_v63  ;;  %v1681_v17 = vpack.c.bf16 %v583_v14, %v582_v54  ;;  %v1079_v3 = vld [vmem:[%s2353_s2 + $0x8] sm:$0xff]  ;;  %v1080_v4 = vld [vmem:[%s2353_s2 + $0x10] sm:$0xff] }
 0x119   :  { %v2177_v12 = vadd.f32 %v2059_v56, %v216_v59  ;;  %v826_v56 = vld [vmem:[%s2350_s1 + $0x2e0] sm:$0xff] }
 0x11a   :  { %1676 = vmatpush3.bf16.msra.mxu1 %v1675_v5  ;;  %1490 = vmatmul.mubr.msk.f32.vlgmr.msra.gmra.mrb[18].mxu0 %vm89_vm0, %v328_v6  ;;  %v1714_v20 = vpack.c.bf16 %v827_v16, %v826_v56  ;;  %v1744_v5 = vpack.c.bf16 %v1079_v3, %v1078_v2  ;;  %v1081_v6 = vld [vmem:[%s2353_s2 + $0x18] sm:$0xff] }
 0x11b   :  { %1677 = vmatprep.subr.bf16.mxu1 %v1762_v63  ;;  %1709 = vmatpush3.bf16.msra.mxu0 %v1708_v9  ;;  %v331_v51 = vmax.f32 %v2177_v12, 0.0  ;;  %v1747_v7 = vpack.c.bf16 %v1081_v6, %v1080_v4  ;;  %v1083_v9 = vld [vmem:[%s2353_s2 + $0x28] sm:$0xff] }
 0x11c   :  { %1710 = vmatprep.subr.bf16.mxu0 %v1762_v63  ;;  %1527 = vmatprep.mubr.msk.f32.mxu0 %vm1763_vm1, %v1764_v36  ;;  %v1750_v59 = vpack.c.bf16 %v1083_v9, %v1082_v8 }
 0x11e   :  { %1679 = vmatpush3.bf16.msra.mxu1 %v1678_v13 }
 0x11f   :  { %1680 = vmatprep.subr.bf16.mxu1 %v1762_v63  ;;  %1712 = vmatpush3.bf16.msra.mxu0 %v1711_v15 }
 0x120   :  { %1713 = vmatprep.subr.bf16.mxu0 %v1762_v63 }
 0x122   :  { %1682 = vmatpush3.bf16.msra.mxu1 %v1681_v17 }
 0x123   :  { %1695 = vmatprep.subr.bf16.mxu1 %v1762_v63  ;;  %1715 = vmatpush3.bf16.msra.mxu0 %v1714_v20 }
 0x124   :  { %1716 = vmatprep.subr.bf16.mxu0 %v1762_v63 }
 0x125   :  { %1471 = vmatmul.mubr.msk.f32.vlgmr.msra.gmra.mrb[12].mxu1 %vm89_vm0, %v327_v24 }
 0x126   :  { %1697 = vmatpush3.bf16.msra.mxu1 %v1696_v23  ;;  %1508 = vmatprep.mubr.msk.f32.mxu1 %vm1763_vm1, %v1764_v36 }
 0x127   :  { %1698 = vmatprep.subr.bf16.mxu1 %v1762_v63  ;;  %1718 = vmatpush3.bf16.msra.mxu0 %v1717_v27  ;;  %v1202_v27 = vld [vmem:[%s2352_s3 + $0x1] ss:$0 sm:$0xff] }
 0x128   :  { %1731 = vmatprep.subr.bf16.mxu0 %v1762_v63 }
 0x12a   :  { %1700 = vmatpush3.bf16.msra.mxu1 %v1699_v29  ;;  %1528 = vmatmul.mubr.msk.f32.vlgmr.msra.gmra.mrb[20].mxu0 %vm89_vm0, %v330_v30 }
 0x12b   :  { %1701 = vmatprep.subr.bf16.mxu1 %v1762_v63  ;;  %1565 = vmatprep.mubr.msk.f32.mxu0 %vm1763_vm1, %v1764_v36 }
 0x12c   :  { %1733 = vmatpush3.bf16.msra.mxu0 %v1732_v57 }
 0x12d   :  { %1734 = vmatprep.subr.bf16.mxu0 %v1762_v63 }
 0x12e   :  { %1703 = vmatpush3.bf16.msra.mxu1 %v1702_v32 }
 0x12f   :  { %1704 = vmatprep.subr.bf16.mxu1 %v1762_v63 }
 0x130   :  { %1736 = vmatpush3.bf16.msra.mxu0 %v1735_v60 }
 0x131   :  { %1737 = vmatprep.subr.bf16.mxu0 %v1762_v63 }
 0x132   :  { %1706 = vmatpush3.bf16.msra.mxu1 %v1705_v35  ;;  %v1753_v35 = vpack.c.bf16 %v1085_v34, %v1084_v33 }
 0x133   :  { %1719 = vmatprep.subr.bf16.mxu1 %v1762_v63 }
 0x135   :  { %1509 = vmatmul.mubr.msk.f32.vlgmr.msra.gmra.mrb[14].mxu1 %vm89_vm0, %v329_v40 }
 0x136   :  { %1721 = vmatpush3.bf16.msra.mxu1 %v1720_v39  ;;  %1546 = vmatprep.mubr.msk.f32.mxu1 %vm1763_vm1, %v1764_v36 }
 0x137   :  { %1722 = vmatprep.subr.bf16.mxu1 %v1762_v63 }
 0x13a   :  { %1724 = vmatpush3.bf16.msra.mxu1 %v1723_v43  ;;  %v1164_v43 = vand.u32 127, %v1163_v42 }
 0x13b   :  { %1725 = vmatprep.subr.bf16.mxu1 %v1762_v63 }
 0x13c   :  { %vm1165_vm2 = vcmp.lt.s32.totalorder %v1164_v43, 6 }
 0x13e   :  { %1727 = vmatpush3.bf16.msra.mxu1 %v1726_v46 }
 0x13f   :  { %1728 = vmatprep.subr.bf16.mxu1 %v1762_v63 }
 0x142   :  { %1730 = vmatpush3.bf16.msra.mxu1 %v1729_v49 }
 0x143   :  { %1743 = vmatprep.subr.bf16.mxu1 %v1762_v63 }
 0x145   :  { %1547 = vmatmul.mubr.msk.f32.vlgmr.msra.gmra.mrb[16].mxu1 %vm89_vm0, %v331_v51 }
 0x146   :  { %1584 = vmatprep.mubr.msk.f32.mxu1 %vm1763_vm1, %v1764_v36  ;;  %v996_v36 = vld [vmem:[%s2350_s1 + $0x360] sm:$0xff]  ;;  %1745 = vmatpush3.bf16.msra.mxu1 %v1744_v5 }
 0x147   :  { %v1738_v61 = vpack.c.bf16 %v997_v50, %v996_v36  ;;  %1746 = vmatprep.subr.bf16.mxu1 %v1762_v63 }
 0x149   :  { %1739 = vmatpush3.bf16.msra.mxu0 %v1738_v61 }
 0x14a   :  { %1740 = vmatprep.subr.bf16.mxu0 %v1762_v63  ;;  %1748 = vmatpush3.bf16.msra.mxu1 %v1747_v7 }
 0x14b   :  { %1749 = vmatprep.subr.bf16.mxu1 %v1762_v63 }
 0x14d   :  { %1742 = vmatpush3.bf16.msra.mxu0 %v1741_v1 }
 0x14e   :  { %1751 = vmatpush3.bf16.msra.mxu1 %v1750_v59 }
 0x14f   :  { %1752 = vmatprep.subr.bf16.mxu1 %v1762_v63 }
 0x152   :  { %1754 = vmatpush3.bf16.msra.mxu1 %v1753_v35 }
 0x1d8   :  { %v417_v10 = vpop.f32.mrb[8].mxu1 }
 0x1d9   :  { %v1415_v11 = vpop.f32.mrb[9].mxu1 }
 0x1dc   :  { %v571_v12 = vpop.f32.mrb[16].mxu0 }
 0x1dd   :  { %v1453_v13 = vpop.f32.mrb[17].mxu0 }
 0x1e8   :  { %v490_v54 = vpop.f32.mrb[10].mxu1 }
 0x1e9   :  { %v491_v14 = vadd.f32 %v490_v54, %v417_v10  ;;  %v1434_v15 = vpop.f32.mrb[11].mxu1 }
 0x1eb   :  { %v575_v56 = vadd.f32 %v571_v12, %v491_v14 }
 0x1ed   :  { %v735_v16 = vpop.f32.mrb[18].mxu0 }
 0x1ee   :  { %v1491_v17 = vpop.f32.mrb[19].mxu0 }
 0x1f8   :  { %v653_v18 = vpop.f32.mrb[12].mxu1 }
 0x1f9   :  { %v657_v19 = vadd.f32 %v653_v18, %v575_v56  ;;  %v1472_v20 = vpop.f32.mrb[13].mxu1 }
 0x1fb   :  { %v739_v21 = vadd.f32 %v735_v16, %v657_v19 }
 0x1fd   :  { %v899_v22 = vpop.f32.mrb[20].mxu0 }
 0x1fe   :  { %v1529_v23 = vpop.f32.mrb[21].mxu0 }
 0x208   :  { %v817_v24 = vpop.f32.mrb[14].mxu1 }
 0x209   :  { %v821_v25 = vadd.f32 %v817_v24, %v739_v21  ;;  %v1510_v26 = vpop.f32.mrb[15].mxu1 }
 0x20b   :  { %v903_v63 = vadd.f32 %v899_v22, %v821_v25 }
 0x218   :  { %v981_v29 = vpop.f32.mrb[16].mxu1 }
 0x219   :  { %v985_v30 = vadd.f32 %v981_v29, %v903_v63  ;;  %v1548_v28 = vpop.f32.mrb[17].mxu1 }
 0x21b   :  { %v990_v31 = vadd.f32 %v1202_v27, %v985_v30 }
 0x21d   :  { %v991_v32 = vmax.f32 %v990_v31, 0.0 }
 0x21f   :  { %1566 = vmatmul.mubr.msk.f32.vlgmr.msra.gmra.mrb[22].mxu0 %vm89_vm0, %v991_v32 }
 0x2f2   :  { %v1073_v38 = vpop.f32.mrb[22].mxu0 }
 0x2f3   :  { %v1074_v39 = vadd.f32 %v1203_v37, %v1073_v38  ;;  %v1567_v40 = vpop.f32.mrb[23].mxu0 }
 0x2f5   :  { %v1077_v41 = vmax.f32 %v1074_v39, 0.0 }
 0x2f7   :  { %1585 = vmatmul.mubr.msk.f32.vlgmr.msra.gmra.mrb[18].mxu1 %vm89_vm0, %v1077_v41 }
 0x3ca   :  { %v1159_v45 = vpop.f32.mrb[18].mxu1 }
 0x3cb   :  { %v1160_v46 = vadd.f32 %v1205_v44, %v1159_v45  ;;  %v1586_v47 = vpop.f32.mrb[19].mxu1 }
 0x3cd   :  { %v1166_v48 = vsel %vm1165_vm2, %v1160_v46, -inf }
 0x3ce   :  { %1167 = vmax.xlane.f32.xlu0 %v1166_v48 }
 0x45b   :  { %v1168_v49 = vpop.xlane.xlu0 %1167 }
 0x45c   :  { %v1169_v51 = vsub.f32 %v1160_v46, %v1168_v49 }
 0x45e   :  { %v1170_v52 = vsel %vm1165_vm2, %v1169_v51, 0.0 }
 0x45f   :  { %v1171_v53 = vmul.f32 1.442695, %v1170_v52 }
 0x461   :  { %1758 = vpow2.f32 %v1171_v53 }
 0x46b   :  { %v1759_v55 = vpop.eup %1758 }
 0x46c   :  { %v1173_v57 = vsel %vm1165_vm2, %v1759_v55, 0.0 }
 0x46d   :  { %1174 = vadd.xlane.f32.xlu0 %v1173_v57 }
 0x4fa   :  { %v1175_v58 = vpop.xlane.xlu0 %1174 }
 0x4fb   :  { %1760 = vlog2.f32 %v1175_v58 }
 0x505   :  { %v1761_v60 = vpop.eup %1760 }
 0x506   :  { %v1177_v36 = vmul.f32 0.6931472, %v1761_v60 }
 0x508   :  { %v1178_v50 = vsub.f32 %v1169_v51, %v1177_v36 }
 0x50a   :  { %v1179_v61 = vsel %vm1165_vm2, %v1178_v50, %v1160_v46 }
 0x50b   :  { %1180 = vst [vmem:[%s2354_s4] sm:$0xff] %v1179_v61 }

</bundles_post_ra>
